<compile_context>
chip_gen: v7x
topology: tpu7x:2x2x1
jax: 0.10.0
libtpu: 0.0.40
codegen_flags: <defaults>
</compile_context>

<pallas_src>
import jax
import jax.numpy as jnp
from jax.experimental import pallas as pl
from jax.experimental.pallas import tpu as pltpu


# -----------------------------------------------------------------------------
# Problem sizes (consistent with the module defaults)
# -----------------------------------------------------------------------------
BATCH = 8
STATE_DIM = 32
N_ACTIONS = 8
LATENT = 64          # latent_state_dim
ENC_HID = 128        # encoder / inverse hidden_dim
FWD_HID = 32         # forward-model head hidden_dim (network_block default)
ACT_EMB = 64         # action_embedding_dim default
ETA = 1.0

# -----------------------------------------------------------------------------
# Packed parameter slab layout: 328 rows x 128 lanes of f32 (164 KiB).
#   rows [0,32)    : enc_w1  (32,128)                                 lanes [0,128)
#   rows [32,160)  : enc_w2  (128,64) lanes [0,64)
#                    fwd_w1  (128,32) lanes [64,96)
#                    inv_w2  (128,8)  lanes [96,104)
#   rows [160,288) : inv_w1  (128,128)                                lanes [0,128)
#   rows [288,320) : act_emb (8,64)   rows [288,296) lanes [0,64)
#                    fwd_w2  (32,64)  rows [288,320) lanes [64,128)
#   rows [320,328) : biases, one per sublane:
#                    0 enc_b1(128)  1 inv_b1(128)  2 enc_b2(64)
#                    3 inv_b2(8)    4 fwd_b1(32)   5 fwd_b2(64)
# -----------------------------------------------------------------------------
ROW_ENC_W1 = 0
ROW_BLK_B = 32
ROW_INV_W1 = 160
ROW_BLK_D = 288
ROW_BIAS = 320
SLAB_ROWS = 328
SLAB_COLS = 128

COL_FWD_W1 = LATENT                       # 64
COL_INV_W2 = LATENT + FWD_HID             # 96


def pack_params(params):
    """One-time host-side packing of the 13 parameter tensors into one slab."""
    p = {k: jnp.asarray(v, jnp.float32) for k, v in params.items()}
    slab = jnp.zeros((SLAB_ROWS, SLAB_COLS), jnp.float32)
    slab = slab.at[ROW_ENC_W1:ROW_ENC_W1 + STATE_DIM, :ENC_HID].set(p["enc_w1"])
    slab = slab.at[ROW_BLK_B:ROW_BLK_B + ENC_HID, :LATENT].set(p["enc_w2"])
    slab = slab.at[ROW_BLK_B:ROW_BLK_B + ENC_HID,
                   COL_FWD_W1:COL_FWD_W1 + FWD_HID].set(p["fwd_w1"])
    slab = slab.at[ROW_BLK_B:ROW_BLK_B + ENC_HID,
                   COL_INV_W2:COL_INV_W2 + N_ACTIONS].set(p["inv_w2"])
    slab = slab.at[ROW_INV_W1:ROW_INV_W1 + 2 * LATENT, :ENC_HID].set(p["inv_w1"])
    slab = slab.at[ROW_BLK_D:ROW_BLK_D + N_ACTIONS, :ACT_EMB].set(p["act_emb"])
    slab = slab.at[ROW_BLK_D:ROW_BLK_D + FWD_HID, LATENT:].set(p["fwd_w2"])
    slab = slab.at[ROW_BIAS + 0, :ENC_HID].set(p["enc_b1"][0])
    slab = slab.at[ROW_BIAS + 1, :ENC_HID].set(p["inv_b1"][0])
    slab = slab.at[ROW_BIAS + 2, :LATENT].set(p["enc_b2"][0])
    slab = slab.at[ROW_BIAS + 3, :N_ACTIONS].set(p["inv_b2"][0])
    slab = slab.at[ROW_BIAS + 4, :FWD_HID].set(p["fwd_b1"][0])
    slab = slab.at[ROW_BIAS + 5, :LATENT].set(p["fwd_b2"][0])
    return slab


# -----------------------------------------------------------------------------
# Pallas kernel: whole ICM forward (both losses) in one VMEM-resident kernel.
# Inputs : state (B,32), next_state (B,32), action (B,1) int32, eta (1,1) SMEM,
#          packed parameter slab (328,128).
# Output : one lane-dense (1,128) row -- lane 0 = loss2, lane 1 = loss1+eta*loss2.
# -----------------------------------------------------------------------------
def _icm_kernel(state_ref, next_state_ref, action_ref, eta_ref, slab_ref, out_ref):
    f32 = jnp.float32

    # --- parameter views: each 128-lane row block is loaded once, then
    #     lane/sublane-sliced in registers (exact widths; padding never leaks) ---
    enc_w1 = slab_ref[pl.ds(ROW_ENC_W1, STATE_DIM), :]                  # (32,128)
    blk_b = slab_ref[pl.ds(ROW_BLK_B, ENC_HID), :]                      # (128,128)
    enc_w2 = blk_b[:, :LATENT]                                          # (128,64)
    fwd_w1 = blk_b[:, COL_FWD_W1:COL_FWD_W1 + FWD_HID]                  # (128,32)
    inv_w2 = blk_b[:, COL_INV_W2:COL_INV_W2 + N_ACTIONS]                # (128,8)
    inv_w1 = slab_ref[pl.ds(ROW_INV_W1, 2 * LATENT), :]                 # (128,128)
    blk_d = slab_ref[pl.ds(ROW_BLK_D, FWD_HID), :]                      # (32,128)
    act_emb_w = blk_d[:N_ACTIONS, :ACT_EMB]                             # (8,64)
    fwd_w2 = blk_d[:, LATENT:]                                          # (32,64)
    biases = slab_ref[pl.ds(ROW_BIAS, 8), :]                            # (8,128)
    enc_b1 = biases[0:1, :ENC_HID]
    inv_b1 = biases[1:2, :ENC_HID]
    enc_b2 = biases[2:3, :LATENT]
    inv_b2 = biases[3:4, :N_ACTIONS]
    fwd_b1 = biases[4:5, :FWD_HID]
    fwd_b2 = biases[5:6, :LATENT]

    # --- fused encoder over [state ; next_state] (one pass, 2B rows) ---
    x2 = jnp.concatenate([state_ref[...], next_state_ref[...]], axis=0)  # (2B,32)
    h = jnp.maximum(
        jnp.dot(x2, enc_w1, preferred_element_type=f32) + enc_b1, 0.0)
    emb = jnp.dot(h, enc_w2, preferred_element_type=f32) + enc_b2        # (2B,64)
    s_emb = emb[:BATCH, :]       # 8-aligned sublane split (BATCH == 8)
    ns_emb = emb[BATCH:, :]

    # --- inverse model: head(concat([s_emb, ns_emb], -1)) -> one MXU push ---
    inv_in = jnp.concatenate([s_emb, ns_emb], axis=-1)                   # (B,128)
    h_inv = jnp.maximum(
        jnp.dot(inv_in, inv_w1, preferred_element_type=f32) + inv_b1, 0.0)
    logits = jnp.dot(h_inv, inv_w2, preferred_element_type=f32) + inv_b2  # (B,8)

    # --- forward model: head(concat([s_emb, embedding(action)], -1)) ---
    act = action_ref[...]                                                # (B,1) i32
    lane_a = jax.lax.broadcasted_iota(jnp.int32, (BATCH, N_ACTIONS), 1)
    onehot = (lane_a == act).astype(f32)                                 # (B,8)
    a_emb = jnp.dot(onehot, act_emb_w, preferred_element_type=f32)       # (B,64)
    fwd_in = jnp.concatenate([s_emb, a_emb], axis=-1)                    # (B,128)
    h_fwd = jnp.maximum(
        jnp.dot(fwd_in, fwd_w1, preferred_element_type=f32) + fwd_b1, 0.0)
    pred_ns = jnp.dot(h_fwd, fwd_w2, preferred_element_type=f32) + fwd_b2  # (B,64)

    # --- loss1: cross entropy (mean over batch); reductions stay 2-D ---
    m = jnp.max(logits, axis=-1, keepdims=True)                               # (B,1)
    lse = m + jnp.log(jnp.sum(jnp.exp(logits - m), axis=-1, keepdims=True))   # (B,1)
    picked = jnp.sum(logits * onehot, axis=-1, keepdims=True)                 # (B,1)
    loss1 = jnp.sum(lse - picked, axis=0, keepdims=True) * (1.0 / BATCH)      # (1,1)

    # --- loss2: 0.5 * sum_f mean_b (pred - target)^2 ---
    diff = pred_ns - ns_emb
    msq = jnp.sum(diff * diff, axis=0, keepdims=True) * (1.0 / BATCH)         # (1,64)
    loss2 = 0.5 * jnp.sum(msq, axis=-1, keepdims=True)                        # (1,1)

    total = loss1 + eta_ref[0, 0] * loss2                                     # (1,1)

    # --- single lane-dense output row: lane 0 = loss2, lane 1 = total ---
    lane = jax.lax.broadcasted_iota(jnp.int32, (1, 128), 1)
    out_ref[...] = (jnp.where(lane == 0, loss2, 0.0)
                    + jnp.where(lane == 1, total, 0.0))


@jax.jit
def icm_forward_pallas(state, next_state, action, slab, eta=ETA):
    """Returns (loss2, loss1 + eta*loss2) like ICMModel.forward."""
    action_col = action.astype(jnp.int32).reshape(BATCH, 1)
    eta_arr = jnp.full((1, 1), eta, jnp.float32)
    out = pl.pallas_call(
        _icm_kernel,
        out_shape=jax.ShapeDtypeStruct((1, SLAB_COLS), jnp.float32),
        in_specs=[
            pl.BlockSpec(memory_space=pltpu.MemorySpace.VMEM),   # state
            pl.BlockSpec(memory_space=pltpu.MemorySpace.VMEM),   # next_state
            pl.BlockSpec(memory_space=pltpu.MemorySpace.VMEM),   # action (B,1) i32
            pl.BlockSpec(memory_space=pltpu.MemorySpace.SMEM),   # eta (1,1)
            pl.BlockSpec(memory_space=pltpu.MemorySpace.VMEM),   # packed param slab
        ],
        out_specs=pl.BlockSpec(memory_space=pltpu.MemorySpace.VMEM),
    )(state, next_state, action_col, eta_arr, slab)
    return out[0, 0], out[0, 1]


# -----------------------------------------------------------------------------
# Pure-JAX reference (for a correctness check) and deterministic param init
# -----------------------------------------------------------------------------
def icm_forward_ref(state, next_state, action, params, eta=ETA):
    def lin(x, w, b):
        return x @ w + b

    def encode(x):
        return lin(jax.nn.relu(lin(x, params["enc_w1"], params["enc_b1"])),
                   params["enc_w2"], params["enc_b2"])

    s_emb = encode(state)
    ns_emb = encode(next_state)
    inv_in = jnp.concatenate([s_emb, ns_emb], axis=-1)
    logits = lin(jax.nn.relu(lin(inv_in, params["inv_w1"], params["inv_b1"])),
                 params["inv_w2"], params["inv_b2"])
    a_emb = params["act_emb"][action]
    fwd_in = jnp.concatenate([s_emb, a_emb], axis=-1)
    pred_ns = lin(jax.nn.relu(lin(fwd_in, params["fwd_w1"], params["fwd_b1"])),
                  params["fwd_w2"], params["fwd_b2"])
    logp = jax.nn.log_softmax(logits, axis=-1)
    loss1 = -jnp.mean(jnp.take_along_axis(logp, action[:, None], axis=-1))
    loss2 = 0.5 * jnp.sum(jnp.mean((pred_ns - ns_emb) ** 2, axis=0))
    return loss2, loss1 + eta * loss2


def init_params(key):
    ks = jax.random.split(key, 16)

    def w(k, shape, fan_in):
        bound = 1.0 / jnp.sqrt(fan_in)
        return jax.random.uniform(k, shape, jnp.float32, -bound, bound)

    return {
        # encoder: Linear(STATE_DIM,128) -> ReLU -> Linear(128,64)
        "enc_w1": w(ks[0], (STATE_DIM, ENC_HID), STATE_DIM),
        "enc_b1": w(ks[1], (1, ENC_HID), STATE_DIM),
        "enc_w2": w(ks[2], (ENC_HID, LATENT), ENC_HID),
        "enc_b2": w(ks[3], (1, LATENT), ENC_HID),
        # inverse head: Linear(2*LATENT,128) -> ReLU -> Linear(128,N_ACTIONS)
        "inv_w1": w(ks[4], (2 * LATENT, ENC_HID), 2 * LATENT),
        "inv_b1": w(ks[5], (1, ENC_HID), 2 * LATENT),
        "inv_w2": w(ks[6], (ENC_HID, N_ACTIONS), ENC_HID),
        "inv_b2": w(ks[7], (1, N_ACTIONS), ENC_HID),
        # forward model: Embedding(N_ACTIONS, ACT_EMB); Linear(128,32)->ReLU->Linear(32,64)
        "act_emb": jax.random.normal(ks[8], (N_ACTIONS, ACT_EMB), jnp.float32),
        "fwd_w1": w(ks[9], (LATENT + ACT_EMB, FWD_HID), LATENT + ACT_EMB),
        "fwd_b1": w(ks[10], (1, FWD_HID), LATENT + ACT_EMB),
        "fwd_w2": w(ks[11], (FWD_HID, LATENT), FWD_HID),
        "fwd_b2": w(ks[12], (1, LATENT), FWD_HID),
    }


if __name__ == "__main__":
    key = jax.random.PRNGKey(0)
    k_params, k_s, k_ns, k_a = jax.random.split(key, 4)

    params = init_params(k_params)
    slab = jax.block_until_ready(pack_params(params))   # one-time packing at init

    state = jax.random.normal(k_s, (BATCH, STATE_DIM), jnp.float32)
    next_state = jax.random.normal(k_ns, (BATCH, STATE_DIM), jnp.float32)
    action = jax.random.randint(k_a, (BATCH,), 0, N_ACTIONS, jnp.int32)

    loss2, total = jax.block_until_ready(
        icm_forward_pallas(state, next_state, action, slab))

    ref_loss2, ref_total = icm_forward_ref(state, next_state, action, params)
    assert jnp.allclose(loss2, ref_loss2, rtol=1e-4, atol=1e-4), (loss2, ref_loss2)
    assert jnp.allclose(total, ref_total, rtol=1e-4, atol=1e-4), (total, ref_total)

    print("KERNEL_OK")
</pallas_src>

<mosaic_0001>
module attributes {stable_mosaic.version = 11 : i64} {
  func.func @_icm_kernel(%arg0: memref<8x32xf32, #tpu.memory_space<vmem>>, %arg1: memref<8x32xf32, #tpu.memory_space<vmem>>, %arg2: memref<8x1xi32, #tpu.memory_space<vmem>>, %arg3: memref<1x1xf32, #tpu.memory_space<smem>>, %arg4: memref<328x128xf32, #tpu.memory_space<vmem>>, %arg5: memref<1x128xf32, #tpu.memory_space<vmem>>) attributes {dimension_semantics = [], scalar_prefetch = 0 : i64, scratch_operands = 0 : i64, tpu.core_type = #tpu.core_type<tc>} {
    %c0 = arith.constant 0 : index
    %c0_0 = arith.constant 0 : index
    %0 = vector.load %arg4[%c0, %c0_0] : memref<328x128xf32, #tpu.memory_space<vmem>>, vector<32x128xf32>
    %c32 = arith.constant 32 : index
    %c0_1 = arith.constant 0 : index
    %1 = vector.load %arg4[%c32, %c0_1] : memref<328x128xf32, #tpu.memory_space<vmem>>, vector<128x128xf32>
    %2 = vector.extract_strided_slice %1 {offsets = [0, 0], sizes = [128, 64], strides = [1, 1]} : vector<128x128xf32> to vector<128x64xf32>
    %3 = vector.extract_strided_slice %1 {offsets = [0, 64], sizes = [128, 32], strides = [1, 1]} : vector<128x128xf32> to vector<128x32xf32>
    %4 = vector.extract_strided_slice %1 {offsets = [0, 96], sizes = [128, 8], strides = [1, 1]} : vector<128x128xf32> to vector<128x8xf32>
    %c160 = arith.constant 160 : index
    %c0_2 = arith.constant 0 : index
    %5 = vector.load %arg4[%c160, %c0_2] : memref<328x128xf32, #tpu.memory_space<vmem>>, vector<128x128xf32>
    %c288 = arith.constant 288 : index
    %c0_3 = arith.constant 0 : index
    %6 = vector.load %arg4[%c288, %c0_3] : memref<328x128xf32, #tpu.memory_space<vmem>>, vector<32x128xf32>
    %7 = vector.extract_strided_slice %6 {offsets = [0, 0], sizes = [8, 64], strides = [1, 1]} : vector<32x128xf32> to vector<8x64xf32>
    %8 = vector.extract_strided_slice %6 {offsets = [0, 64], sizes = [32, 64], strides = [1, 1]} : vector<32x128xf32> to vector<32x64xf32>
    %c320 = arith.constant 320 : index
    %c0_4 = arith.constant 0 : index
    %9 = vector.load %arg4[%c320, %c0_4] : memref<328x128xf32, #tpu.memory_space<vmem>>, vector<8x128xf32>
    %10 = vector.extract_strided_slice %9 {offsets = [0, 0], sizes = [1, 128], strides = [1, 1]} : vector<8x128xf32> to vector<1x128xf32>
    %11 = vector.extract_strided_slice %9 {offsets = [1, 0], sizes = [1, 128], strides = [1, 1]} : vector<8x128xf32> to vector<1x128xf32>
    %12 = vector.extract_strided_slice %9 {offsets = [2, 0], sizes = [1, 64], strides = [1, 1]} : vector<8x128xf32> to vector<1x64xf32>
    %13 = vector.extract_strided_slice %9 {offsets = [3, 0], sizes = [1, 8], strides = [1, 1]} : vector<8x128xf32> to vector<1x8xf32>
    %14 = vector.extract_strided_slice %9 {offsets = [4, 0], sizes = [1, 32], strides = [1, 1]} : vector<8x128xf32> to vector<1x32xf32>
    %15 = vector.extract_strided_slice %9 {offsets = [5, 0], sizes = [1, 64], strides = [1, 1]} : vector<8x128xf32> to vector<1x64xf32>
    %c0_5 = arith.constant 0 : index
    %c0_6 = arith.constant 0 : index
    %16 = vector.load %arg0[%c0_5, %c0_6] : memref<8x32xf32, #tpu.memory_space<vmem>>, vector<8x32xf32>
    %c0_7 = arith.constant 0 : index
    %c0_8 = arith.constant 0 : index
    %17 = vector.load %arg1[%c0_7, %c0_8] : memref<8x32xf32, #tpu.memory_space<vmem>>, vector<8x32xf32>
    %18 = tpu.concatenate %16, %17 in 0 : vector<8x32xf32>, vector<8x32xf32> -> vector<16x32xf32>
    %cst = arith.constant dense<0.000000e+00> : vector<16x128xf32>
    %19 = tpu.matmul %18, %0, %cst {dimension_numbers = #tpu.dot_dimension_numbers<[1], [0], [0], [1], [0, 0, 1, 1], [], []>} : vector<16x32xf32>, vector<32x128xf32>, vector<16x128xf32> -> vector<16x128xf32>
    %20 = vector.broadcast %10 : vector<1x128xf32> to vector<16x128xf32>
    %21 = arith.addf %19, %20 : vector<16x128xf32>
    %cst_9 = arith.constant 0.000000e+00 : f32
    %22 = vector.broadcast %cst_9 : f32 to vector<16x128xf32>
    %23 = arith.maximumf %21, %22 : vector<16x128xf32>
    %cst_10 = arith.constant dense<0.000000e+00> : vector<16x64xf32>
    %24 = tpu.matmul %23, %2, %cst_10 {dimension_numbers = #tpu.dot_dimension_numbers<[1], [0], [0], [1], [0, 0, 1, 1], [], []>} : vector<16x128xf32>, vector<128x64xf32>, vector<16x64xf32> -> vector<16x64xf32>
    %25 = vector.broadcast %12 : vector<1x64xf32> to vector<16x64xf32>
    %26 = arith.addf %24, %25 : vector<16x64xf32>
    %27 = vector.extract_strided_slice %26 {offsets = [0, 0], sizes = [8, 64], strides = [1, 1]} : vector<16x64xf32> to vector<8x64xf32>
    %28 = vector.extract_strided_slice %26 {offsets = [8, 0], sizes = [8, 64], strides = [1, 1]} : vector<16x64xf32> to vector<8x64xf32>
    %29 = tpu.concatenate %27, %28 in 1 : vector<8x64xf32>, vector<8x64xf32> -> vector<8x128xf32>
    %cst_11 = arith.constant dense<0.000000e+00> : vector<8x128xf32>
    %30 = tpu.matmul %29, %5, %cst_11 {dimension_numbers = #tpu.dot_dimension_numbers<[1], [0], [0], [1], [0, 0, 1, 1], [], []>} : vector<8x128xf32>, vector<128x128xf32>, vector<8x128xf32> -> vector<8x128xf32>
    %31 = vector.broadcast %11 : vector<1x128xf32> to vector<8x128xf32>
    %32 = arith.addf %30, %31 : vector<8x128xf32>
    %cst_12 = arith.constant 0.000000e+00 : f32
    %33 = vector.broadcast %cst_12 : f32 to vector<8x128xf32>
    %34 = arith.maximumf %32, %33 : vector<8x128xf32>
    %cst_13 = arith.constant dense<0.000000e+00> : vector<8x8xf32>
    %35 = tpu.matmul %34, %4, %cst_13 {dimension_numbers = #tpu.dot_dimension_numbers<[1], [0], [0], [1], [0, 0, 1, 1], [], []>} : vector<8x128xf32>, vector<128x8xf32>, vector<8x8xf32> -> vector<8x8xf32>
    %36 = vector.broadcast %13 : vector<1x8xf32> to vector<8x8xf32>
    %37 = arith.addf %35, %36 : vector<8x8xf32>
    %c0_14 = arith.constant 0 : index
    %c0_15 = arith.constant 0 : index
    %38 = vector.load %arg2[%c0_14, %c0_15] : memref<8x1xi32, #tpu.memory_space<vmem>>, vector<8x1xi32>
    %39 = tpu.iota {dimensions = array<i32: 1>} : vector<8x8xi32>
    %40 = vector.broadcast %38 : vector<8x1xi32> to vector<8x8xi32>
    %41 = arith.cmpi eq, %39, %40 : vector<8x8xi32>
    %42 = arith.extui %41 : vector<8x8xi1> to vector<8x8xi32>
    %43 = arith.sitofp %42 : vector<8x8xi32> to vector<8x8xf32>
    %cst_16 = arith.constant dense<0.000000e+00> : vector<8x64xf32>
    %44 = tpu.matmul %43, %7, %cst_16 {dimension_numbers = #tpu.dot_dimension_numbers<[1], [0], [0], [1], [0, 0, 1, 1], [], []>} : vector<8x8xf32>, vector<8x64xf32>, vector<8x64xf32> -> vector<8x64xf32>
    %45 = tpu.concatenate %27, %44 in 1 : vector<8x64xf32>, vector<8x64xf32> -> vector<8x128xf32>
    %cst_17 = arith.constant dense<0.000000e+00> : vector<8x32xf32>
    %46 = tpu.matmul %45, %3, %cst_17 {dimension_numbers = #tpu.dot_dimension_numbers<[1], [0], [0], [1], [0, 0, 1, 1], [], []>} : vector<8x128xf32>, vector<128x32xf32>, vector<8x32xf32> -> vector<8x32xf32>
    %47 = vector.broadcast %14 : vector<1x32xf32> to vector<8x32xf32>
    %48 = arith.addf %46, %47 : vector<8x32xf32>
    %cst_18 = arith.constant 0.000000e+00 : f32
    %49 = vector.broadcast %cst_18 : f32 to vector<8x32xf32>
    %50 = arith.maximumf %48, %49 : vector<8x32xf32>
    %cst_19 = arith.constant dense<0.000000e+00> : vector<8x64xf32>
    %51 = tpu.matmul %50, %8, %cst_19 {dimension_numbers = #tpu.dot_dimension_numbers<[1], [0], [0], [1], [0, 0, 1, 1], [], []>} : vector<8x32xf32>, vector<32x64xf32>, vector<8x64xf32> -> vector<8x64xf32>
    %52 = vector.broadcast %15 : vector<1x64xf32> to vector<8x64xf32>
    %53 = arith.addf %51, %52 : vector<8x64xf32>
    %cst_20 = arith.constant dense<0xFF800000> : vector<8xf32>
    %54 = vector.multi_reduction <maximumf>, %37, %cst_20 [1] : vector<8x8xf32> to vector<8xf32>
    %55 = vector.shape_cast %54 : vector<8xf32> to vector<8x1xf32>
    %56 = vector.broadcast %55 : vector<8x1xf32> to vector<8x8xf32>
    %57 = arith.subf %37, %56 : vector<8x8xf32>
    %58 = math.exp %57 : vector<8x8xf32>
    %cst_21 = arith.constant dense<0.000000e+00> : vector<8xf32>
    %59 = vector.multi_reduction <add>, %58, %cst_21 [1] : vector<8x8xf32> to vector<8xf32>
    %60 = vector.shape_cast %59 : vector<8xf32> to vector<8x1xf32>
    %61 = math.log %60 : vector<8x1xf32>
    %62 = arith.addf %55, %61 : vector<8x1xf32>
    %63 = arith.mulf %37, %43 : vector<8x8xf32>
    %cst_22 = arith.constant dense<0.000000e+00> : vector<8xf32>
    %64 = vector.multi_reduction <add>, %63, %cst_22 [1] : vector<8x8xf32> to vector<8xf32>
    %65 = vector.shape_cast %64 : vector<8xf32> to vector<8x1xf32>
    %66 = arith.subf %62, %65 : vector<8x1xf32>
    %cst_23 = arith.constant dense<0.000000e+00> : vector<1xf32>
    %67 = vector.multi_reduction <add>, %66, %cst_23 [0] : vector<8x1xf32> to vector<1xf32>
    %68 = vector.shape_cast %67 : vector<1xf32> to vector<1x1xf32>
    %cst_24 = arith.constant 1.250000e-01 : f32
    %69 = vector.broadcast %cst_24 : f32 to vector<1x1xf32>
    %70 = arith.mulf %68, %69 : vector<1x1xf32>
    %71 = arith.subf %53, %28 : vector<8x64xf32>
    %72 = arith.mulf %71, %71 : vector<8x64xf32>
    %cst_25 = arith.constant dense<0.000000e+00> : vector<64xf32>
    %73 = vector.multi_reduction <add>, %72, %cst_25 [0] : vector<8x64xf32> to vector<64xf32>
    %74 = vector.shape_cast %73 : vector<64xf32> to vector<1x64xf32>
    %cst_26 = arith.constant 1.250000e-01 : f32
    %75 = vector.broadcast %cst_26 : f32 to vector<1x64xf32>
    %76 = arith.mulf %74, %75 : vector<1x64xf32>
    %cst_27 = arith.constant dense<0.000000e+00> : vector<1xf32>
    %77 = vector.multi_reduction <add>, %76, %cst_27 [1] : vector<1x64xf32> to vector<1xf32>
    %78 = vector.shape_cast %77 : vector<1xf32> to vector<1x1xf32>
    %cst_28 = arith.constant 5.000000e-01 : f32
    %79 = vector.broadcast %cst_28 : f32 to vector<1x1xf32>
    %80 = arith.mulf %79, %78 : vector<1x1xf32>
    %c0_29 = arith.constant 0 : index
    %c0_30 = arith.constant 0 : index
    %81 = memref.load %arg3[%c0_29, %c0_30] : memref<1x1xf32, #tpu.memory_space<smem>>
    %82 = vector.broadcast %81 : f32 to vector<1x1xf32>
    %83 = arith.mulf %82, %80 : vector<1x1xf32>
    %84 = arith.addf %70, %83 : vector<1x1xf32>
    %85 = tpu.iota {dimensions = array<i32: 1>} : vector<1x128xi32>
    %c0_i32 = arith.constant 0 : i32
    %86 = vector.broadcast %c0_i32 : i32 to vector<1x128xi32>
    %87 = arith.cmpi eq, %85, %86 : vector<1x128xi32>
    %cst_31 = arith.constant 0.000000e+00 : f32
    %88 = vector.shape_cast %80 : vector<1x1xf32> to vector<1x1xf32>
    %89 = vector.broadcast %88 : vector<1x1xf32> to vector<1x128xf32>
    %90 = vector.broadcast %cst_31 : f32 to vector<1x128xf32>
    %91 = arith.select %87, %89, %90 : vector<1x128xi1>, vector<1x128xf32>
    %c1_i32 = arith.constant 1 : i32
    %92 = vector.broadcast %c1_i32 : i32 to vector<1x128xi32>
    %93 = arith.cmpi eq, %85, %92 : vector<1x128xi32>
    %cst_32 = arith.constant 0.000000e+00 : f32
    %94 = vector.shape_cast %84 : vector<1x1xf32> to vector<1x1xf32>
    %95 = vector.broadcast %94 : vector<1x1xf32> to vector<1x128xf32>
    %96 = vector.broadcast %cst_32 : f32 to vector<1x128xf32>
    %97 = arith.select %93, %95, %96 : vector<1x128xi1>, vector<1x128xf32>
    %98 = arith.addf %91, %97 : vector<1x128xf32>
    %c0_33 = arith.constant 0 : index
    %c0_34 = arith.constant 0 : index
    %99 = vector.load %arg5[%c0_33, %c0_34] : memref<1x128xf32, #tpu.memory_space<vmem>>, vector<1x128xf32>
    tpu.vector_store %arg5[%c0_33, %c0_34], %98 {strides = array<i32>} : memref<1x128xf32, #tpu.memory_space<vmem>>, vector<1x128xf32>,
    return
  }
}

</mosaic_0001>

<bundles_post_ra>
// kernel: icm_forward_pallas.1
= control target key start
LH: loop header
LB: loop body
LE: loop exit
PB: predicated region body
PF: predicated region fallthrough
CT: control target
= control target key end

     0   :  { %11 = vsyncpa [#allocation4], 0  ;;  %s1321_s18 = smov [#allocation3]   ;;  %s1578_s0 = inlined_call_operand.vmem [shape: f32[8,32], index: 0, kind: input, shape index: {}]   ;;  %s1579_s1 = inlined_call_operand.vmem [shape: f32[8,32], index: 1, kind: input, shape index: {}]   ;;  %s1580_s2 = inlined_call_operand.vmem [shape: s32[8,1], index: 2, kind: input, shape index: {}]   ;;  %s1581_s3 = inlined_call_operand.<no memory space> [shape: f32[1,1], index: 3, kind: input, shape index: {}]   ;;  %s1582_s4 = inlined_call_operand.hbm [shape: f32[328,128], index: 4, kind: input, shape index: {}]   ;;  %s1583_s5 = inlined_call_operand.vmem [shape: f32[1,128], index: 5, kind: output, shape index: {}]  }
   0x1   :  { %s25_s19 = sshll.u32 %s1321_s18, 4  ;;  %s1297_s22 = scalar_lea.hbm %s1582_s4, 5248  ;;  %s26_s19 = int_to_ptr.vmem [resolvable:$true] %s25_s19 }
   0x2   :  { %p1298_p0 = scmp.ne.s32.totalorder %s1582_s4, %s1297_s22  ;;  %p1301_p1 = scmp.lt.u32.totalorder %s1297_s22, %s1582_s4 }
   0x4   :  { %p1303_p2 = pnand %p1301_p1, %p1298_p0 }
   0x6   :  { %1306 = shalt.err (!%p1303_p2)
}
   0x7   :  { %s1307_s27 = scalar_lea.vmem %s26_s19, 5248  ;;  %p1312_p4 = scmp.lt.s32.totalorder %s26_s19, %s26_s19 }
   0x8   :  { %p1308_p3 = scmp.ne.s32.totalorder %s26_s19, %s1307_s27  ;;  %p1313_p5 = scmp.lt.s32.totalorder %s1307_s27, %s1307_s27 }
   0xa   :  { %p1314_p6 = por %p1313_p5, %p1312_p4 }
   0xc   :  { %p1315_p7 = pnand %p1314_p6, %p1308_p3 }
   0xe   :  { %1318 = shalt.err (!%p1315_p7)
}
   0xf   :  { %s1322_s28 = smov 128   ;;  %s1323_s29 = smov 8  }
  0x10   :  { %31 = dma.hbm_to_vmem [thread:$0]  %s1582_s4, 5248, %s26_s19, [#allocation4], %s1322_s28, %s1322_s28, %s1323_s29  }
  0x11   :  { %1319 = dma.done.wait [#allocation4], 5248  }
  0x12   :  { %1320 = vsyncadd [#allocation4], 4294962048  ;;  %vm82_vm0 = vcmask 261120   ;;  %v35_v0 = vld [vmem:[#allocation3] sm:$0xff]  ;;  %v36_v1 = vld [vmem:[#allocation3 + $0x8] sm:$0xff]  ;;  %v1324_v33 = vmov 0   ;;  %v78_v34 = vlaneseq }
  0x13   :  { %v37_v2 = vld [vmem:[#allocation3 + $0x10] sm:$0xff]  ;;  %v1075_v3 = vpack.c.bf16 %v36_v1, %v35_v0  ;;  %v38_v4 = vld [vmem:[#allocation3 + $0x18] sm:$0xff]  ;;  %v76_v5 = vld [vmem:[%s1578_s0] sm:$0xff]  ;;  %1202 = vset.pattern.permute.xlu0 %v1324_v33  ;;  %v1325_v48 = vmov 0.0|0.0   ;;  %vm1327_vm1 = vmmov 0   ;;  %vm249_vm2 = vcmask 523264  }
  0x14   :  { %v1079_v6 = vpack.c.bf16 %v38_v4, %v37_v2  ;;  %916 = vmatprep.mubr.msk.f32.mxu0 %vm82_vm0, %v76_v5  ;;  %v1376_v7 = vld [vmem:[#allocation3 + $0x20] sm:$0xff]  ;;  %v1378_v8 = vld [vmem:[#allocation3 + $0x28] sm:$0xff]  ;;  %v1380_v9 = vld [vmem:[#allocation3 + $0x30] sm:$0xff]  ;;  %v1432_v35 = vshrl.u32 %v78_v34, 7  ;;  %vm473_vm4 = vcmask 64512   ;;  %s1329_s10 = smov 32  }
  0x15   :  { %1076 = vmatprep.subr.bf16.mxu0 %v1075_v3  ;;  %v1083_v10 = vpack.c.bf16 %v1378_v8, %v1376_v7  ;;  %v1384_v11 = vld [vmem:[#allocation3 + $0x38] sm:$0xff]  ;;  %v1388_v13 = vld [vmem:[#allocation3 + $0x40] sm:$0xff]  ;;  %v1390_v14 = vld [vmem:[#allocation3 + $0x48] sm:$0xff] }
  0x16   :  { %1078 = vmatpush3.bf16.msra.mxu0 %v1075_v3  ;;  %v1087_v12 = vpack.c.bf16 %v1384_v11, %v1380_v9  ;;  %v1091_v15 = vpack.c.bf16 %v1390_v14, %v1388_v13  ;;  %v77_v16 = vld [vmem:[%s1579_s1] sm:$0xff]  ;;  %v1397_v17 = vld [vmem:[#allocation3 + $0x50] sm:$0xff]  ;;  %v1399_v18 = vld [vmem:[#allocation3 + $0x58] sm:$0xff]  ;;  %v80_v36 = vsub.s32 0, %v1432_v35 }
  0x17   :  { %1080 = vmatprep.subr.bf16.mxu0 %v1079_v6  ;;  %1084 = vmatprep.subr.bf16.mxu1 %v1083_v10  ;;  %v1095_v19 = vpack.c.bf16 %v1399_v18, %v1397_v17  ;;  %v1404_v20 = vld [vmem:[#allocation3 + $0x60] sm:$0xff]  ;;  %v1406_v21 = vld [vmem:[#allocation3 + $0x68] sm:$0xff]  ;;  %v1410_v23 = vld [vmem:[#allocation3 + $0x70] sm:$0xff] }
  0x18   :  { %1086 = vmatpush3.bf16.msra.mxu1 %v1083_v10  ;;  %v1099_v22 = vpack.c.bf16 %v1406_v21, %v1404_v20  ;;  %v1412_v24 = vld [vmem:[#allocation3 + $0x78] sm:$0xff]  ;;  %v1416_v26 = vld [vmem:[#allocation3 + $0x80] sm:$0xff]  ;;  %v1418_v27 = vld [vmem:[#allocation3 + $0x88] sm:$0xff]  ;;  %v168_v10 = vsub.s32 2, %v1432_v35 }
  0x19   :  { %1088 = vmatprep.subr.bf16.mxu1 %v1087_v12  ;;  %v1103_v25 = vpack.c.bf16 %v1412_v24, %v1410_v23  ;;  %v1107_v28 = vpack.c.bf16 %v1418_v27, %v1416_v26  ;;  %v1422_v29 = vld [vmem:[#allocation3 + $0x90] sm:$0xff]  ;;  %v1424_v30 = vld [vmem:[#allocation3 + $0x98] sm:$0xff]  ;;  %v464_v32 = vld [vmem:[%s1580_s2] sm:$0xff]  ;;  %s1328_s2 = smov 64  }
  0x1a   :  { %1082 = vmatpush3.bf16.msra.mxu0 %v1079_v6  ;;  %v1111_v31 = vpack.c.bf16 %v1424_v30, %v1422_v29  ;;  %468 = vperm.xlu0 %1202, %v464_v32   ;;  %v1435_v37 = vld [vmem:[#allocation3 + $0x140] sm:$0xff]  ;;  %v56_v46 = vld [vmem:[#allocation3 + $0xa8] sm:$0xff]  ;;  %v57_v47 = vld [vmem:[#allocation3 + $0xb0] sm:$0xff]  ;;  %v1326_v6 = vmov 0.0  }
  0x1b   :  { %v81_v38 = vrot.slane %v1435_v37, %v80_v36  ;;  %v55_v45 = vld [vmem:[#allocation3 + $0xa0] sm:$0xff]  ;;  %1115 = vmatprep.subr.bf16.mxu0 %v1325_v48  ;;  %v58_v50 = vld [vmem:[#allocation3 + $0xb8] sm:$0xff]  ;;  %v60_v53 = vld [vmem:[#allocation3 + $0xc8] sm:$0xff] }
  0x1c   :  { %1090 = vmatpush3.bf16.msra.mxu1 %v1087_v12  ;;  %v1116_v49 = vpack.c.bf16 %v56_v46, %v55_v45  ;;  %v1119_v51 = vpack.c.bf16 %v58_v50, %v57_v47  ;;  %v59_v52 = vld [vmem:[#allocation3 + $0xc0] sm:$0xff]  ;;  %v61_v55 = vld [vmem:[#allocation3 + $0xd0] sm:$0xff]  ;;  %v62_v56 = vld [vmem:[#allocation3 + $0xd8] sm:$0xff]  ;;  %v1203_v12 = vpack.i.bf16 %v1378_v8, %v1376_v7  ;;  %v1213_v8 = vpack.i.bf16 %v1390_v14, %v1388_v13 }
  0x1d   :  { %917 = vmatmul.mubr.msk.f32.vlgmr.msra.gmra.mrb[0].mxu0 %vm82_vm0, %v77_v16  ;;  %1092 = vmatprep.subr.bf16.mxu1 %v1091_v15  ;;  %v1122_v54 = vpack.c.bf16 %v60_v53, %v59_v52  ;;  %v1125_v57 = vpack.c.bf16 %v62_v56, %v61_v55  ;;  %v63_v58 = vld [vmem:[#allocation3 + $0xe0] sm:$0xff]  ;;  %v64_v59 = vld [vmem:[#allocation3 + $0xe8] sm:$0xff]  ;;  %v65_v61 = vld [vmem:[#allocation3 + $0xf0] sm:$0xff]  ;;  %v1459_v16 = vpack.i.bf16 %v1384_v11, %v1380_v9 }
  0x1e   :  { %1117 = vmatpush3.bf16.msra.mxu0 %v1116_v49  ;;  %v1128_v60 = vpack.c.bf16 %v64_v59, %v63_v58  ;;  %v66_v62 = vld [vmem:[#allocation3 + $0xf8] sm:$0xff]  ;;  %v67_v0 = vld [vmem:[#allocation3 + $0x100] sm:$0xff]  ;;  %v68_v1 = vld [vmem:[#allocation3 + $0x108] sm:$0xff]  ;;  %986 = vmatprep.mubr.msk.f32.mxu0 %vm1327_vm1, %v1326_v6  ;;  %v1479_v9 = vpack.i.bf16 %v1412_v24, %v1410_v23  ;;  %v1223_v11 = vpack.i.bf16 %v1406_v21, %v1404_v20 }
  0x1f   :  { %1118 = vmatprep.subr.bf16.mxu0 %v1325_v48  ;;  %v1131_v63 = vpack.c.bf16 %v66_v62, %v65_v61  ;;  %v1134_v2 = vpack.c.bf16 %v68_v1, %v67_v0  ;;  %v69_v3 = vld [vmem:[#allocation3 + $0x110] sm:$0xff]  ;;  %v70_v4 = vld [vmem:[#allocation3 + $0x118] sm:$0xff]  ;;  %1204 = vrot.lane.b32.xlu1 %v1203_v12, %s1328_s2  ;;  %v1233_v13 = vpack.i.bf16 %v1418_v27, %v1416_v26  ;;  %v1499_v21 = vld [vmem:[#allocation3 + $0x120] sm:$0xff] }
  0x20   :  { %1094 = vmatpush3.bf16.msra.mxu1 %v1091_v15  ;;  %v1137_v5 = vpack.c.bf16 %v70_v4, %v69_v3  ;;  %v169_v15 = vrot.slane %v1435_v37, %v168_v10  ;;  %v72_v10 = vld [vmem:[#allocation3 + $0x128] sm:$0xff] }
  0x21   :  { %1096 = vmatprep.subr.bf16.mxu1 %v1095_v19 }
  0x22   :  { %1120 = vmatpush3.bf16.msra.mxu0 %v1119_v51 }
  0x23   :  { %1121 = vmatprep.subr.bf16.mxu0 %v1325_v48  ;;  %1209 = vrot.lane.b32.xlu1 %v1459_v16, %s1328_s2 }
  0x24   :  { %1098 = vmatpush3.bf16.msra.mxu1 %v1095_v19 }
  0x25   :  { %1100 = vmatprep.subr.bf16.mxu1 %v1099_v22 }
  0x26   :  { %1123 = vmatpush3.bf16.msra.mxu0 %v1122_v54 }
  0x27   :  { %1124 = vmatprep.subr.bf16.mxu0 %v1325_v48 }
  0x28   :  { %1102 = vmatpush3.bf16.msra.mxu1 %v1099_v22 }
  0x29   :  { %1104 = vmatprep.subr.bf16.mxu1 %v1103_v25 }
  0x2a   :  { %1126 = vmatpush3.bf16.msra.mxu0 %v1125_v57 }
  0x2b   :  { %1127 = vmatprep.subr.bf16.mxu0 %v1325_v48 }
  0x2c   :  { %1106 = vmatpush3.bf16.msra.mxu1 %v1103_v25 }
  0x2d   :  { %1108 = vmatprep.subr.bf16.mxu1 %v1107_v28 }
  0x2e   :  { %1129 = vmatpush3.bf16.msra.mxu0 %v1128_v60 }
  0x2f   :  { %1130 = vmatprep.subr.bf16.mxu0 %v1325_v48 }
  0x30   :  { %1110 = vmatpush3.bf16.msra.mxu1 %v1107_v28  ;;  %v1467_v28 = vpack.i.bf16 %v1399_v18, %v1397_v17  ;;  %v1488_v17 = vpack.i.bf16 %v1424_v30, %v1422_v29  ;;  %v1497_v18 = vand.u32 127, %v78_v34 }
  0x31   :  { %1112 = vmatprep.subr.bf16.mxu1 %v1111_v31 }
  0x32   :  { %1132 = vmatpush3.bf16.msra.mxu0 %v1131_v63  ;;  %1219 = vrot.lane.b32.xlu1 %v1467_v28, %s1328_s2  ;;  %vm810_vm5 = vcmp.eq.s32.totalorder %v1497_v18, 0  ;;  %vm812_vm6 = vcmp.eq.s32.totalorder %v1497_v18, 1 }
  0x33   :  { %1133 = vmatprep.subr.bf16.mxu0 %v1325_v48 }
  0x34   :  { %1114 = vmatpush3.bf16.msra.mxu1 %v1111_v31 }
  0x35   :  { %1139 = vmatprep.subr.bf16.mxu1 %v1325_v48 }
  0x36   :  { %1135 = vmatpush3.bf16.msra.mxu0 %v1134_v2  ;;  %1229 = vrot.lane.b32.xlu1 %v1479_v9, %s1328_s2 }
  0x37   :  { %1136 = vmatprep.subr.bf16.mxu0 %v1325_v48 }
  0x3a   :  { %1138 = vmatpush3.bf16.msra.mxu0 %v1137_v5  ;;  %1239 = vrot.lane.b32.xlu1 %v1488_v17, %s1328_s2 }
  0x3b   :  { %1024 = vmatprep.subr.mxu0 %v1326_v6 }
  0x3e   :  { %1244 = vrot.lane.b32.xlu1 %v1203_v12, %s1329_s10  ;;  %v73_v12 = vld [vmem:[#allocation3 + $0x130] sm:$0xff] }
  0x42   :  { %1254 = vrot.lane.b32.xlu1 %v1213_v8, %s1329_s10 }
  0x46   :  { %1264 = vrot.lane.b32.xlu1 %v1223_v11, %s1329_s10 }
  0x4a   :  { %1274 = vrot.lane.b32.xlu1 %v1233_v13, %s1329_s10 }
  0x91   :  { %v1205_v26 = vpop.permute.xlu1 %1204 }
  0x92   :  { %v1207_v27 = vunpack.i.h.bf16 %v1205_v26  ;;  %v1206_v29 = vunpack.i.l.bf16 %v1205_v26 }
  0x94   :  { %v1164_v31 = vpack.c.bf16 %v1207_v27, %v1206_v29 }
  0x95   :  { %v1210_v32 = vpop.permute.xlu1 %1209 }
  0x96   :  { %v1212_v33 = vunpack.i.h.bf16 %v1210_v32  ;;  %v1211_v34 = vunpack.i.l.bf16 %v1210_v32 }
  0x99   :  { %v469_v14 = vpop.permute.xlu0 %468 }
  0x9a   :  { %vm470_vm3 = vcmp.eq.s32.totalorder %v1497_v18, %v469_v14 }
  0x9b   :  { %v1509_v24 = vsel %vm470_vm3, 1.0, %v1326_v6 }
  0xf0   :  { %v918_v39 = vpop.f32.mrb[0].mxu0 }
  0xf1   :  { %v161_v40 = vadd.f32 %v918_v39, %v81_v38  ;;  %v155_v41 = vpop.f32.mrb[1].mxu0  ;;  %v1167_v39 = vpack.c.bf16 %v1212_v33, %v1211_v34 }
  0xf2   :  { %v156_v42 = vadd.f32 %v155_v41, %v81_v38 }
  0xf3   :  { %v165_v44 = vmax.f32 %v161_v40, 0.0  ;;  %v1220_v40 = vpop.permute.xlu1 %1219 }
  0xf4   :  { %v164_v43 = vmax.f32 %v156_v42, 0.0  ;;  %v1222_v42 = vunpack.i.h.bf16 %v1220_v40 }
  0xf6   :  { %951 = vmatprep.mubr.f32.mxu1 %v164_v43  ;;  %v1221_v43 = vunpack.i.l.bf16 %v1220_v40 }
  0xf7   :  { %952 = vmatmul.mubr.f32.vlgmr.msra.gmra.mrb[0].mxu1 %v165_v44  ;;  %v1230_v49 = vpop.permute.xlu1 %1229 }
  0xf8   :  { %1021 = vmatprep.mubr.msk.f32.mxu1 %vm1327_vm1, %v1326_v6  ;;  %v1173_v45 = vpack.c.bf16 %v1222_v42, %v1221_v43  ;;  %v1232_v51 = vunpack.i.h.bf16 %v1230_v49  ;;  %v1231_v52 = vunpack.i.l.bf16 %v1230_v49  ;;  %v253_v42 = vsub.s32 1, %v1432_v35 }
  0xfa   :  { %v1179_v54 = vpack.c.bf16 %v1232_v51, %v1231_v52 }
  0xfb   :  { %v1240_v57 = vpop.permute.xlu1 %1239 }
  0xfc   :  { %v1242_v59 = vunpack.i.h.bf16 %v1240_v57  ;;  %v1241_v60 = vunpack.i.l.bf16 %v1240_v57 }
  0xfe   :  { %v1185_v61 = vpack.c.bf16 %v1242_v59, %v1241_v60  ;;  %v554_v60 = vsub.s32 4, %v1432_v35 }
  0xff   :  { %v1245_v62 = vpop.permute.xlu1 %1244 }
 0x100   :  { %v1247_v63 = vunpack.i.h.bf16 %v1245_v62  ;;  %v1246_v0 = vunpack.i.l.bf16 %v1245_v62 }
 0x102   :  { %v1140_v1 = vpack.c.bf16 %v1247_v63, %v1246_v0 }
 0x104   :  { %1141 = vmatpush3.bf16.msra.mxu1 %v1140_v1 }
 0x105   :  { %1142 = vmatprep.subr.bf16.mxu1 %v1325_v48 }
 0x1ca   :  { %v953_v19 = vpop.f32.mrb[0].mxu1 }
 0x1cb   :  { %v1461_v22 = vadd.f32 %v953_v19, %v169_v15  ;;  %v236_v25 = vpop.f32.mrb[1].mxu1  ;;  %v1283_v19 = vpack.i.bf16 %v72_v10, %v1499_v21 }
 0x1cc   :  { %v1469_v7 = vadd.f32 %v236_v25, %v169_v15  ;;  %v74_v15 = vld [vmem:[#allocation3 + $0x138] sm:$0xff] }
 0x1cd   :  { %246 = vrot.lane.b32.xlu0 %v1461_v22, %s1328_s2  ;;  %v1288_v25 = vpack.i.bf16 %v74_v15, %v73_v12  ;;  %1284 = vrot.lane.b32.xlu1 %v1283_v19, %s1328_s2 }
 0x1d1   :  { %1214 = vrot.lane.b32.xlu0 %v1213_v8, %s1328_s2  ;;  %v1255_v8 = vpop.permute.xlu1 %1254 }
 0x1d2   :  { %v1256_v14 = vunpack.i.l.bf16 %v1255_v8 }
 0x1d5   :  { %1224 = vrot.lane.b32.xlu0 %v1223_v11, %s1328_s2  ;;  %v1265_v29 = vpop.permute.xlu1 %1264 }
 0x1d9   :  { %1234 = vrot.lane.b32.xlu0 %v1233_v13, %s1328_s2 }
 0x23f   :  { %v247_v20 = vpop.permute.xlu0 %246 }
 0x240   :  { %v250_v23 = vsel %vm249_vm2, %v1469_v7, %v247_v20 }
 0x241   :  { %987 = vmatmul.mubr.f32.vlgmr.msra.gmra.mrb[2].mxu0 %v250_v23 }
 0x242   :  { %1025 = vmatpush3.msra.mxu0 %v1499_v21  ;;  %1026 = vmatprep.mubr.msk.f32.mxu0 %vm1327_vm1, %v1326_v6 }
 0x243   :  { %1163 = vmatprep.subr.bf16.mxu0 %v1325_v48  ;;  %v1215_v30 = vpop.permute.xlu0 %1214 }
 0x244   :  { %v1217_v36 = vunpack.i.h.bf16 %v1215_v30  ;;  %v1216_v38 = vunpack.i.l.bf16 %v1215_v30 }
 0x245   :  { %1027 = vmatmul.mubr.msk.f32.vlgmr.msra.gmra.mrb[4].mxu0 %vm473_vm4, %v1509_v24 }
 0x246   :  { %1061 = vmatprep.mubr.msk.f32.mxu0 %vm1327_vm1, %v1326_v6  ;;  %1165 = vmatpush3.bf16.msra.mxu0 %v1164_v31  ;;  %v1170_v41 = vpack.c.bf16 %v1217_v36, %v1216_v38  ;;  %v1267_v31 = vunpack.i.h.bf16 %v1265_v29  ;;  %v1275_v38 = vpop.permute.xlu1 %1274 }
 0x247   :  { %1166 = vmatprep.subr.bf16.mxu0 %v1325_v48  ;;  %v1225_v44 = vpop.permute.xlu0 %1224  ;;  %v1277_v40 = vunpack.i.h.bf16 %v1275_v38 }
 0x248   :  { %v1227_v46 = vunpack.i.h.bf16 %v1225_v44  ;;  %v1226_v47 = vunpack.i.l.bf16 %v1225_v44 }
 0x24a   :  { %1168 = vmatpush3.bf16.msra.mxu0 %v1167_v39  ;;  %v1176_v50 = vpack.c.bf16 %v1227_v46, %v1226_v47  ;;  %v254_v47 = vrot.slane %v1435_v37, %v253_v42  ;;  %v1285_v49 = vpop.permute.xlu1 %1284 }
 0x24b   :  { %1169 = vmatprep.subr.bf16.mxu0 %v1325_v48  ;;  %v1235_v53 = vpop.permute.xlu0 %1234  ;;  %v1287_v51 = vunpack.i.h.bf16 %v1285_v49  ;;  %v1286_v52 = vunpack.i.l.bf16 %v1285_v49 }
 0x24c   :  { %v1237_v55 = vunpack.i.h.bf16 %v1235_v53  ;;  %v1236_v56 = vunpack.i.l.bf16 %v1235_v53 }
 0x24e   :  { %1171 = vmatpush3.bf16.msra.mxu0 %v1170_v41  ;;  %v1182_v58 = vpack.c.bf16 %v1237_v55, %v1236_v56  ;;  %v1276_v41 = vunpack.i.l.bf16 %v1275_v38  ;;  %v1188_v55 = vpack.c.bf16 %v1287_v51, %v1286_v52 }
 0x24f   :  { %1172 = vmatprep.subr.bf16.mxu0 %v1325_v48 }
 0x250   :  { %v1158_v44 = vpack.c.bf16 %v1277_v40, %v1276_v41 }
 0x252   :  { %1174 = vmatpush3.bf16.msra.mxu0 %v1173_v45 }
 0x253   :  { %1175 = vmatprep.subr.bf16.mxu0 %v1325_v48 }
 0x256   :  { %1177 = vmatpush3.bf16.msra.mxu0 %v1176_v50 }
 0x257   :  { %1178 = vmatprep.subr.bf16.mxu0 %v1325_v48 }
 0x25a   :  { %1180 = vmatpush3.bf16.msra.mxu0 %v1179_v54 }
 0x25b   :  { %1181 = vmatprep.subr.bf16.mxu0 %v1325_v48 }
 0x25e   :  { %1183 = vmatpush3.bf16.msra.mxu0 %v1182_v58 }
 0x25f   :  { %1184 = vmatprep.subr.bf16.mxu0 %v1325_v48 }
 0x262   :  { %1186 = vmatpush3.bf16.msra.mxu0 %v1185_v61  ;;  %v555_v61 = vrot.slane %v1435_v37, %v554_v60 }
 0x314   :  { %v1527_v2 = vpop.f32.mrb[2].mxu0 }
 0x315   :  { %v988_v3 = vpop.f32.mrb[3].mxu0  ;;  %v322_v53 = vadd.f32 %v1527_v2, %v254_v47  ;;  %v328_v2 = vsub.s32 3, %v1432_v35 }
 0x317   :  { %v325_v58 = vmax.f32 %v322_v53, 0.0  ;;  %v329_v3 = vrot.slane %v1435_v37, %v328_v2 }
 0x318   :  { %v543_v4 = vpop.f32.mrb[4].mxu0 }
 0x319   :  { %548 = vrot.lane.b32.xlu0 %v543_v4, %s1328_s2  ;;  %v1028_v5 = vpop.f32.mrb[5].mxu0 }
 0x31d   :  { %1249 = vrot.lane.b32.xlu0 %v1459_v16, %s1329_s10 }
 0x321   :  { %1259 = vrot.lane.b32.xlu0 %v1467_v28, %s1329_s10 }
 0x325   :  { %1269 = vrot.lane.b32.xlu0 %v1479_v9, %s1329_s10 }
 0x329   :  { %1279 = vrot.lane.b32.xlu0 %v1488_v17, %s1329_s10  ;;  %v1257_v17 = vunpack.i.h.bf16 %v1255_v8  ;;  %v677_v8 = vsub.s32 5, %v1432_v35 }
 0x32b   :  { %v1146_v26 = vpack.c.bf16 %v1257_v17, %v1256_v14 }
 0x32d   :  { %1289 = vrot.lane.b32.xlu0 %v1288_v25, %s1328_s2 }
 0x38b   :  { %v549_v16 = vpop.permute.xlu0 %548 }
 0x38c   :  { %v551_v28 = vsel %vm249_vm2, %v1469_v7, %v549_v16  ;;  %v1266_v7 = vunpack.i.l.bf16 %v1265_v29 }
 0x38d   :  { %1062 = vmatmul.mubr.f32.vlgmr.msra.gmra.mrb[6].mxu0 %v551_v28 }
 0x38e   :  { %v1152_v33 = vpack.c.bf16 %v1267_v31, %v1266_v7 }
 0x38f   :  { %v1250_v9 = vpop.permute.xlu0 %1249 }
 0x390   :  { %v1252_v11 = vunpack.i.h.bf16 %v1250_v9  ;;  %v1251_v13 = vunpack.i.l.bf16 %v1250_v9  ;;  %v678_v9 = vrot.slane %v1435_v37, %v677_v8 }
 0x392   :  { %v1143_v20 = vpack.c.bf16 %v1252_v11, %v1251_v13 }
 0x393   :  { %v1260_v23 = vpop.permute.xlu0 %1259 }
 0x394   :  { %1144 = vmatpush3.bf16.msra.mxu1 %v1143_v20  ;;  %v1262_v21 = vunpack.i.h.bf16 %v1260_v23  ;;  %v1261_v27 = vunpack.i.l.bf16 %v1260_v23 }
 0x395   :  { %1145 = vmatprep.subr.bf16.mxu1 %v1325_v48 }
 0x396   :  { %v1149_v30 = vpack.c.bf16 %v1262_v21, %v1261_v27 }
 0x397   :  { %v1270_v32 = vpop.permute.xlu0 %1269 }
 0x398   :  { %1147 = vmatpush3.bf16.msra.mxu1 %v1146_v26  ;;  %v1272_v34 = vunpack.i.h.bf16 %v1270_v32  ;;  %v1271_v36 = vunpack.i.l.bf16 %v1270_v32 }
 0x399   :  { %1148 = vmatprep.subr.bf16.mxu1 %v1325_v48 }
 0x39a   :  { %v1155_v39 = vpack.c.bf16 %v1272_v34, %v1271_v36 }
 0x39b   :  { %v1280_v43 = vpop.permute.xlu0 %1279 }
 0x39c   :  { %1150 = vmatpush3.bf16.msra.mxu1 %v1149_v30  ;;  %v1282_v45 = vunpack.i.h.bf16 %v1280_v43  ;;  %v1281_v46 = vunpack.i.l.bf16 %v1280_v43  ;;  %v807_v43 = vstv %s1581_s3 }
 0x39d   :  { %1151 = vmatprep.subr.bf16.mxu1 %v1325_v48 }
 0x39e   :  { %v1161_v50 = vpack.c.bf16 %v1282_v45, %v1281_v46 }
 0x39f   :  { %v1290_v54 = vpop.permute.xlu0 %1289 }
 0x3a0   :  { %1153 = vmatpush3.bf16.msra.mxu1 %v1152_v33  ;;  %v1292_v56 = vunpack.i.h.bf16 %v1290_v54  ;;  %v1291_v57 = vunpack.i.l.bf16 %v1290_v54 }
 0x3a1   :  { %1154 = vmatprep.subr.bf16.mxu1 %v1325_v48 }
 0x3a2   :  { %v1191_v59 = vpack.c.bf16 %v1292_v56, %v1291_v57 }
 0x3a4   :  { %1156 = vmatpush3.bf16.msra.mxu1 %v1155_v39 }
 0x3a5   :  { %1157 = vmatprep.subr.bf16.mxu1 %v1325_v48 }
 0x3a8   :  { %1159 = vmatpush3.bf16.msra.mxu1 %v1158_v44 }
 0x3a9   :  { %1160 = vmatprep.subr.bf16.mxu1 %v1325_v48 }
 0x3ac   :  { %1162 = vmatpush3.bf16.msra.mxu1 %v1161_v50 }
 0x3ad   :  { %1187 = vmatprep.subr.bf16.mxu1 %v1325_v48 }
 0x3af   :  { %1022 = vmatmul.mubr.f32.vlgmr.msra.gmra.mrb[2].mxu1 %v325_v58 }
 0x3b0   :  { %1189 = vmatpush3.bf16.msra.mxu1 %v1188_v55  ;;  %1072 = vmatprep.mubr.msk.f32.mxu1 %vm1327_vm1, %v1326_v6 }
 0x3b1   :  { %1190 = vmatprep.subr.bf16.mxu1 %v1325_v48 }
 0x3b4   :  { %1192 = vmatpush3.bf16.msra.mxu1 %v1191_v59 }
 0x460   :  { %v670_v62 = vpop.f32.mrb[6].mxu0 }
 0x461   :  { %v671_v63 = vadd.f32 %v670_v62, %v555_v61  ;;  %v1063_v0 = vpop.f32.mrb[7].mxu0 }
 0x463   :  { %v674_v1 = vmax.f32 %v671_v63, 0.0 }
 0x465   :  { %1073 = vmatmul.mubr.msk.f32.vlgmr.msra.gmra.mrb[4].mxu1 %vm82_vm0, %v674_v1 }
 0x482   :  { %v460_v4 = vpop.f32.mrb[2].mxu1 }
 0x483   :  { %v461_v5 = vadd.f32 %v460_v4, %v329_v3  ;;  %v1023_v6 = vpop.f32.mrb[3].mxu1 }
 0x485   :  { %v768_v48 = vsel %vm473_vm4, %v461_v5, -inf  ;;  %v780_v16 = vmul.f32 %v1509_v24, %v461_v5 }
 0x486   :  { %769 = vmax.xlane.f32.xlu1 %v768_v48 }
 0x487   :  { %v781_v28 = vsel %vm473_vm4, %v780_v16, 0.0 }
 0x513   :  { %v770_v10 = vpop.xlane.xlu1 %769 }
 0x514   :  { %v771_v12 = vsub.f32 %v461_v5, %v770_v10 }
 0x516   :  { %v772_v15 = vmul.f32 1.442695, %v771_v12 }
 0x518   :  { %1293 = vpow2.f32 %v772_v15 }
 0x522   :  { %v1294_v19 = vpop.eup %1293 }
 0x523   :  { %v774_v25 = vsel %vm473_vm4, %v1294_v19, 0.0 }
 0x524   :  { %775 = vadd.xlane.f32.xlu0 %v774_v25 }
 0x528   :  { %782 = vadd.xlane.f32.xlu0 %v781_v28 }
 0x538   :  { %v764_v11 = vpop.f32.mrb[4].mxu1 }
 0x539   :  { %v765_v13 = vadd.f32 %v764_v11, %v678_v9  ;;  %v1074_v17 = vpop.f32.mrb[5].mxu1 }
 0x53b   :  { %v792_v14 = vsub.f32 %v765_v13, %v1461_v22 }
 0x53d   :  { %v793_v20 = vmul.f32 %v792_v14, %v792_v14 }
 0x53f   :  { %v794_v23 = vsel %vm249_vm2, %v793_v20, 0.0 }
 0x540   :  { %v795_v26 = vrot.slane %v794_v23, 4 }
 0x542   :  { %v796_v21 = vadd.f32 %v795_v26, %v794_v23 }
 0x544   :  { %v797_v27 = vrot.slane %v796_v21, 2 }
 0x546   :  { %v798_v24 = vadd.f32 %v797_v27, %v796_v21 }
 0x548   :  { %v799_v29 = vrot.slane %v798_v24, 1 }
 0x54a   :  { %v800_v30 = vadd.f32 %v799_v29, %v798_v24 }
 0x54c   :  { %v801_v31 = vmul.f32 0.125, %v800_v30 }
 0x54e   :  { %v802_v7 = vsel %vm249_vm2, %v801_v31, 0.0 }
 0x54f   :  { %803 = vadd.xlane.f32.xlu1 %v802_v7 }
 0x5b1   :  { %v776_v35 = vpop.xlane.xlu0 %775 }
 0x5b2   :  { %1295 = vlog2.f32 %v776_v35 }
 0x5b5   :  { %v783_v34 = vpop.xlane.xlu0 %782 }
 0x5bc   :  { %v1296_v37 = vpop.eup %1295 }
 0x5bd   :  { %v778_v32 = vmul.f32 0.6931472, %v1296_v37 }
 0x5bf   :  { %v779_v33 = vadd.f32 %v778_v32, %v770_v10 }
 0x5c1   :  { %v784_v22 = vsub.f32 %v779_v33, %v783_v34 }
 0x5c3   :  { %v785_v36 = vrot.slane %v784_v22, 4 }
 0x5c5   :  { %v786_v38 = vadd.f32 %v785_v36, %v784_v22 }
 0x5c7   :  { %v787_v39 = vrot.slane %v786_v38, 2 }
 0x5c9   :  { %v788_v40 = vadd.f32 %v787_v39, %v786_v38 }
 0x5cb   :  { %v789_v41 = vrot.slane %v788_v40, 1 }
 0x5cd   :  { %v790_v42 = vadd.f32 %v789_v41, %v788_v40 }
 0x5cf   :  { %v791_v46 = vmul.f32 0.125, %v790_v42 }
 0x5dc   :  { %v804_v44 = vpop.xlane.xlu1 %803 }
 0x5dd   :  { %v805_v45 = vmul.f32 0.5, %v804_v44 }
 0x5df   :  { %v808_v47 = vmul.f32 %v807_v43, %v805_v45  ;;  %v811_v50 = vsel %vm810_vm5, %v805_v45, 0.0 }
 0x5e1   :  { %v809_v49 = vadd.f32 %v808_v47, %v791_v46 }
 0x5e3   :  { %v813_v51 = vsel %vm812_vm6, %v809_v49, 0.0 }
 0x5e4   :  { %v814_v52 = vadd.f32 %v813_v51, %v811_v50 }
 0x5e6   :  { %815 = vst [vmem:[%s1583_s5] sm:$0x1] %v814_v52 }
 0x5e7   :  { %820 = vsyncpa [#allocation4], 1 }

</bundles_post_ra>
